<compile_context>
chip_gen: v5e
topology: v5e:2x2
jax: 0.10.0
libtpu: 0.0.40
codegen_flags: <defaults>
</compile_context>

<pallas_src>
import jax
import jax.numpy as jnp
from jax.experimental import pallas as pl
from jax.experimental.pallas import tpu as pltpu

INPUT_DIM = 32
NUM_CLASSES = 2
FC1_W = 32          # n_examples=None  => fc1_w = 32
FC2_W = 16          # max(16, 32 // 2)
OUT_W = 16          # max(out_floor=16, 16 // 4)
BN_EPS = 1e-5

# ----------------------------------------------------------------------------
# Packed-parameter layout (feature-major): six Linear layers (BN pre-folded),
# each stored TRANSPOSED as (out, in), concatenated along rows in one bf16
# [112, 32] array.  Biases live at the same row offsets in one f32 [112, 1]
# array.  Row offsets are static multiples of 16 (bf16 sublane tile) so the
# in-kernel slices are zero-cost, tile-aligned views.
# ----------------------------------------------------------------------------
_WT_DIMS = ((FC1_W, INPUT_DIM), (FC2_W, FC1_W), (FC2_W, FC2_W),
            (FC2_W, FC2_W), (OUT_W, FC2_W), (NUM_CLASSES, OUT_W))   # (out, in)
_OFFS = tuple(int(sum(d[0] for d in _WT_DIMS[:i])) for i in range(len(_WT_DIMS)))


def _round_up(n, m):
    return ((n + m - 1) // m) * m


_W_ROWS = _round_up(int(sum(d[0] for d in _WT_DIMS)), 16)   # 98 -> 112
_PACK_LANES = int(max(d[1] for d in _WT_DIMS))              # 32


def _slice_w(wp, idx):
    r0 = _OFFS[idx]
    out_d, in_d = _WT_DIMS[idx]
    return wp[r0:r0 + out_d, 0:in_d]           # (out, in) bf16


def _slice_b(bp, idx):
    r0 = _OFFS[idx]
    out_d = _WT_DIMS[idx][0]
    return bp[r0:r0 + out_d, 0:1]              # (out, 1) f32, lane-broadcast in the add


def _chain(x_t, w, b):
    """Feature-major forward: x_t is (32, t) bf16, returns (2, t) f32 logits.

    bf16 MXU operands with f32 accumulation; all elementwise math in f32;
    activations cast to bf16 exactly once after each ReLU.
    """
    def lin(h_bf16, wi, bi):
        return jnp.dot(wi, h_bf16, preferred_element_type=jnp.float32) + bi

    def blk(h_bf16, wi, bi):
        # Linear -> folded BatchNorm (already in wi/bi) -> ReLU -> Dropout(eval = id)
        return jnp.maximum(lin(h_bf16, wi, bi), 0.0).astype(jnp.bfloat16)

    h1 = blk(x_t, w[0], b[0])                          # fc1
    h2 = blk(h1, w[1], b[1])                           # fc2
    r = lin(blk(h2, w[2], b[2]), w[3], b[3])           # res branch (f32)
    h3 = (h2.astype(jnp.float32) + r).astype(jnp.bfloat16)   # residual add
    return lin(blk(h3, w[4], b[4]), w[5], b[5])        # out head -> logits (2, t) f32


def _forward_math(x_t_bf16, wp, bp):
    """Whole-tile forward on packed params (works on refs or plain arrays)."""
    w = [_slice_w(wp, i) for i in range(6)]
    b = [_slice_b(bp, i) for i in range(6)]
    return _chain(x_t_bf16, w, b)


def plug_kernel(x_ref, wp_ref, bp_ref, o_ref):
    # x_ref: (32, tb) bf16; wp_ref: (112, 32) bf16; bp_ref: (112, 1) f32; o_ref: (2, tb) f32.
    w = [_slice_w(wp_ref, i) for i in range(6)]        # loaded once, reused by both chains
    b = [_slice_b(bp_ref, i) for i in range(6)]
    tb = x_ref.shape[1]
    half = tb // 2                                     # multiple of 128 (tb % 256 == 0)
    # Two independent sub-chains, statically unrolled, to overlap MXU drains/casts.
    for s in range(2):
        lo, hi = s * half, (s + 1) * half
        o_ref[:, lo:hi] = _chain(x_ref[:, lo:hi], w, b)


def plug_classifier_forward(x, wpack, bpack, *, tb=2048):
    """Fused PlugClassifier inference.  x: [B, INPUT_DIM] float; returns [B, 2] f32."""
    B, D = x.shape
    assert D == INPUT_DIM

    LANE_TILE = 256    # 2 interleaved sub-chains of >= 128 lanes each
    tb_req = max(LANE_TILE, _round_up(tb, LANE_TILE))
    # Cap only so the "parallel" grid keeps >= 2 steps (both v7x TensorCores) when B allows.
    cap = max(LANE_TILE, _round_up(_round_up(B, LANE_TILE) // 2, LANE_TILE))
    tb_eff = min(tb_req, cap)
    Bp = _round_up(B, tb_eff)

    # Feature-major input: batch on the 128-lane axis; bf16 MXU operand.
    x_t = x.T.astype(jnp.bfloat16)                     # (32, B)
    if Bp != B:
        x_t = jnp.pad(x_t, ((0, 0), (0, Bp - B)))

    out_t = pl.pallas_call(
        plug_kernel,
        out_shape=jax.ShapeDtypeStruct((NUM_CLASSES, Bp), jnp.float32),
        grid_spec=pltpu.PrefetchScalarGridSpec(
            num_scalar_prefetch=0,
            grid=(Bp // tb_eff,),
            in_specs=[
                pl.BlockSpec((INPUT_DIM, tb_eff), lambda i: (0, i)),
                # Packed params: full extent, resident in VMEM across the grid.
                pl.BlockSpec((_W_ROWS, _PACK_LANES), lambda i: (0, 0)),
                pl.BlockSpec((_W_ROWS, 1), lambda i: (0, 0)),
            ],
            out_specs=pl.BlockSpec((NUM_CLASSES, tb_eff), lambda i: (0, i)),
        ),
        compiler_params=pltpu.CompilerParams(dimension_semantics=("parallel",)),
    )(x_t, wpack, bpack)
    return out_t[:, :B].T                              # (B, 2)


# ----------------------------------------------------------------------------
# Parameter construction (synthetic, PyTorch-style init) + BN folding + packing.
# ----------------------------------------------------------------------------
def init_params(key):
    def linear(k, fan_in, fan_out):
        kw, kb = jax.random.split(k)
        bound = 1.0 / (fan_in ** 0.5)
        w = jax.random.uniform(kw, (fan_in, fan_out), jnp.float32, -bound, bound)
        b = jax.random.uniform(kb, (1, fan_out), jnp.float32, -bound, bound)
        return w, b

    def bn(k, width):
        kg, kb, km, kv = jax.random.split(k, 4)
        gamma = 1.0 + 0.1 * jax.random.normal(kg, (1, width), jnp.float32)
        beta = 0.1 * jax.random.normal(kb, (1, width), jnp.float32)
        mean = 0.1 * jax.random.normal(km, (1, width), jnp.float32)
        var = jnp.abs(1.0 + 0.1 * jax.random.normal(kv, (1, width), jnp.float32))
        scale = gamma / jnp.sqrt(var + BN_EPS)
        shift = beta - mean * scale
        return scale, shift

    ks = jax.random.split(key, 10)
    w1, b1 = linear(ks[0], INPUT_DIM, FC1_W); s1, t1 = bn(ks[1], FC1_W)   # fc1 block
    w2, b2 = linear(ks[2], FC1_W, FC2_W);     s2, t2 = bn(ks[3], FC2_W)   # fc2 block
    w3, b3 = linear(ks[4], FC2_W, FC2_W);     s3, t3 = bn(ks[5], FC2_W)   # res block
    w4, b4 = linear(ks[6], FC2_W, FC2_W)                                  # res linear
    w5, b5 = linear(ks[7], FC2_W, OUT_W);     s5, t5 = bn(ks[8], OUT_W)   # out block
    w6, b6 = linear(ks[9], OUT_W, NUM_CLASSES)                            # out linear
    return (w1, b1, s1, t1, w2, b2, s2, t2, w3, b3, s3, t3,
            w4, b4, w5, b5, s5, t5, w6, b6)


def fold_and_pack(raw):
    """Fold BN (eval) into the Linears, transpose to (out, in) and pack."""
    (w1, b1, s1, t1, w2, b2, s2, t2, w3, b3, s3, t3,
     w4, b4, w5, b5, s5, t5, w6, b6) = raw

    def fold(w, b, s, t):
        return w * s, b * s + t          # per-output-channel scale/shift

    w1f, b1f = fold(w1, b1, s1, t1)
    w2f, b2f = fold(w2, b2, s2, t2)
    w3f, b3f = fold(w3, b3, s3, t3)
    w5f, b5f = fold(w5, b5, s5, t5)
    weights = (w1f, w2f, w3f, w4, w5f, w6)   # (in, out) each
    biases = (b1f, b2f, b3f, b4, b5f, b6)    # (1, out) each

    wpack = jnp.zeros((_W_ROWS, _PACK_LANES), jnp.float32)
    bpack = jnp.zeros((_W_ROWS, 1), jnp.float32)
    for i, (w, b) in enumerate(zip(weights, biases)):
        out_d, in_d = _WT_DIMS[i]
        r0 = _OFFS[i]
        wpack = wpack.at[r0:r0 + out_d, :in_d].set(w.T)   # store W^T (out, in)
        bpack = bpack.at[r0:r0 + out_d, 0].set(b[0])
    return wpack.astype(jnp.bfloat16), bpack


def reference_forward_f32(x, raw):
    """Pure-f32, un-folded module math (eval mode) — ground truth for the plumbing."""
    (w1, b1, s1, t1, w2, b2, s2, t2, w3, b3, s3, t3,
     w4, b4, w5, b5, s5, t5, w6, b6) = raw

    def block(h, w, b, s, t):
        return jnp.maximum((h @ w + b) * s + t, 0.0)

    h1 = block(x, w1, b1, s1, t1)
    h2 = block(h1, w2, b2, s2, t2)
    r = block(h2, w3, b3, s3, t3) @ w4 + b4
    h3 = h2 + r
    return block(h3, w5, b5, s5, t5) @ w6 + b6


if __name__ == "__main__":
    key = jax.random.PRNGKey(0)
    kx, kp = jax.random.split(key)

    batch = 300   # exercises batch padding and a 2-step "parallel" grid (tb_eff=256)
    x = jax.random.normal(kx, (batch, INPUT_DIM), jnp.float32)
    raw = init_params(kp)
    wpack, bpack = fold_and_pack(raw)

    out = plug_classifier_forward(x, wpack, bpack, tb=2048)
    out = jax.block_until_ready(out)
    assert out.shape == (batch, NUM_CLASSES)

    # Tight check: identical bf16/f32 mixed-precision feature-major math run through XLA.
    ref_packed = _forward_math(x.T.astype(jnp.bfloat16), wpack, bpack).T
    assert jnp.allclose(out, ref_packed, rtol=2e-2, atol=2e-2), "mismatch vs packed reference"

    # Loose check: pure-f32 un-folded module math (validates BN folding + transposed packing).
    ref_f32 = reference_forward_f32(x, raw)
    assert jnp.allclose(out, ref_f32, rtol=6e-2, atol=6e-2), "mismatch vs f32 module reference"

    # TODO(synk): training-mode Dropout / BatchNorm batch-statistics are not implemented
    # (this kernel is the deterministic eval/inference path).
    print("KERNEL_OK")
</pallas_src>

<mosaic_0001>
module attributes {stable_mosaic.version = 11 : i64} {
  func.func @plug_kernel(%arg0: i32, %arg1: memref<32x256xbf16, #tpu.memory_space<vmem>>, %arg2: memref<112x32xbf16, #tpu.memory_space<vmem>>, %arg3: memref<112x1xf32, #tpu.memory_space<vmem>>, %arg4: memref<2x256xf32, #tpu.memory_space<vmem>>) attributes {dimension_semantics = [#tpu.dimension_semantics<parallel>], iteration_bounds = array<i64: 2>, scalar_prefetch = 0 : i64, scratch_operands = 0 : i64, tpu.core_type = #tpu.core_type<tc>, window_params = [{transform_indices = @transform_0, window_bounds = array<i64: 32, 256>}, {pipeline_mode = #tpu.pipeline_mode<synchronous>, transform_indices = @transform_1, window_bounds = array<i64: 112, 32>}, {pipeline_mode = #tpu.pipeline_mode<synchronous>, transform_indices = @transform_2, window_bounds = array<i64: 112, 1>}, {transform_indices = @transform_3, window_bounds = array<i64: 2, 256>}]} {
    %c0 = arith.constant 0 : index
    %c0_0 = arith.constant 0 : index
    %0 = vector.load %arg2[%c0, %c0_0] : memref<112x32xbf16, #tpu.memory_space<vmem>>, vector<32x32xbf16>
    %c32 = arith.constant 32 : index
    %c0_1 = arith.constant 0 : index
    %1 = vector.load %arg2[%c32, %c0_1] : memref<112x32xbf16, #tpu.memory_space<vmem>>, vector<16x32xbf16>
    %c48 = arith.constant 48 : index
    %c0_2 = arith.constant 0 : index
    %2 = vector.load %arg2[%c48, %c0_2] : memref<112x32xbf16, #tpu.memory_space<vmem>>, vector<16x16xbf16>
    %c64 = arith.constant 64 : index
    %c0_3 = arith.constant 0 : index
    %3 = vector.load %arg2[%c64, %c0_3] : memref<112x32xbf16, #tpu.memory_space<vmem>>, vector<16x16xbf16>
    %c80 = arith.constant 80 : index
    %c0_4 = arith.constant 0 : index
    %4 = vector.load %arg2[%c80, %c0_4] : memref<112x32xbf16, #tpu.memory_space<vmem>>, vector<16x16xbf16>
    %c96 = arith.constant 96 : index
    %c0_5 = arith.constant 0 : index
    %5 = vector.load %arg2[%c96, %c0_5] : memref<112x32xbf16, #tpu.memory_space<vmem>>, vector<2x16xbf16>
    %c0_6 = arith.constant 0 : index
    %c0_7 = arith.constant 0 : index
    %6 = vector.load %arg3[%c0_6, %c0_7] : memref<112x1xf32, #tpu.memory_space<vmem>>, vector<32x1xf32>
    %c32_8 = arith.constant 32 : index
    %c0_9 = arith.constant 0 : index
    %7 = vector.load %arg3[%c32_8, %c0_9] : memref<112x1xf32, #tpu.memory_space<vmem>>, vector<16x1xf32>
    %c48_10 = arith.constant 48 : index
    %c0_11 = arith.constant 0 : index
    %8 = vector.load %arg3[%c48_10, %c0_11] : memref<112x1xf32, #tpu.memory_space<vmem>>, vector<16x1xf32>
    %c64_12 = arith.constant 64 : index
    %c0_13 = arith.constant 0 : index
    %9 = vector.load %arg3[%c64_12, %c0_13] : memref<112x1xf32, #tpu.memory_space<vmem>>, vector<16x1xf32>
    %c80_14 = arith.constant 80 : index
    %c0_15 = arith.constant 0 : index
    %10 = vector.load %arg3[%c80_14, %c0_15] : memref<112x1xf32, #tpu.memory_space<vmem>>, vector<16x1xf32>
    %c96_16 = arith.constant 96 : index
    %c0_17 = arith.constant 0 : index
    %11 = vector.load %arg3[%c96_16, %c0_17] : memref<112x1xf32, #tpu.memory_space<vmem>>, vector<2x1xf32>
    %c0_18 = arith.constant 0 : index
    %c0_19 = arith.constant 0 : index
    %12 = vector.load %arg1[%c0_18, %c0_19] : memref<32x256xbf16, #tpu.memory_space<vmem>>, vector<32x128xbf16>
    %cst = arith.constant dense<0.000000e+00> : vector<32x128xf32>
    %13 = tpu.matmul %0, %12, %cst {dimension_numbers = #tpu.dot_dimension_numbers<[1], [0], [0], [1], [0, 0, 1, 1], [], []>} : vector<32x32xbf16>, vector<32x128xbf16>, vector<32x128xf32> -> vector<32x128xf32>
    %14 = vector.broadcast %6 : vector<32x1xf32> to vector<32x128xf32>
    %15 = arith.addf %13, %14 : vector<32x128xf32>
    %cst_20 = arith.constant 0.000000e+00 : f32
    %16 = vector.broadcast %cst_20 : f32 to vector<32x128xf32>
    %17 = arith.maximumf %15, %16 : vector<32x128xf32>
    %18 = arith.truncf %17 : vector<32x128xf32> to vector<32x128xbf16>
    %cst_21 = arith.constant dense<0.000000e+00> : vector<16x128xf32>
    %19 = tpu.matmul %1, %18, %cst_21 {dimension_numbers = #tpu.dot_dimension_numbers<[1], [0], [0], [1], [0, 0, 1, 1], [], []>} : vector<16x32xbf16>, vector<32x128xbf16>, vector<16x128xf32> -> vector<16x128xf32>
    %20 = vector.broadcast %7 : vector<16x1xf32> to vector<16x128xf32>
    %21 = arith.addf %19, %20 : vector<16x128xf32>
    %cst_22 = arith.constant 0.000000e+00 : f32
    %22 = vector.broadcast %cst_22 : f32 to vector<16x128xf32>
    %23 = arith.maximumf %21, %22 : vector<16x128xf32>
    %24 = arith.truncf %23 : vector<16x128xf32> to vector<16x128xbf16>
    %cst_23 = arith.constant dense<0.000000e+00> : vector<16x128xf32>
    %25 = tpu.matmul %2, %24, %cst_23 {dimension_numbers = #tpu.dot_dimension_numbers<[1], [0], [0], [1], [0, 0, 1, 1], [], []>} : vector<16x16xbf16>, vector<16x128xbf16>, vector<16x128xf32> -> vector<16x128xf32>
    %26 = vector.broadcast %8 : vector<16x1xf32> to vector<16x128xf32>
    %27 = arith.addf %25, %26 : vector<16x128xf32>
    %cst_24 = arith.constant 0.000000e+00 : f32
    %28 = vector.broadcast %cst_24 : f32 to vector<16x128xf32>
    %29 = arith.maximumf %27, %28 : vector<16x128xf32>
    %30 = arith.truncf %29 : vector<16x128xf32> to vector<16x128xbf16>
    %cst_25 = arith.constant dense<0.000000e+00> : vector<16x128xf32>
    %31 = tpu.matmul %3, %30, %cst_25 {dimension_numbers = #tpu.dot_dimension_numbers<[1], [0], [0], [1], [0, 0, 1, 1], [], []>} : vector<16x16xbf16>, vector<16x128xbf16>, vector<16x128xf32> -> vector<16x128xf32>
    %32 = vector.broadcast %9 : vector<16x1xf32> to vector<16x128xf32>
    %33 = arith.addf %31, %32 : vector<16x128xf32>
    %34 = arith.extf %24 : vector<16x128xbf16> to vector<16x128xf32>
    %35 = arith.addf %34, %33 : vector<16x128xf32>
    %36 = arith.truncf %35 : vector<16x128xf32> to vector<16x128xbf16>
    %cst_26 = arith.constant dense<0.000000e+00> : vector<16x128xf32>
    %37 = tpu.matmul %4, %36, %cst_26 {dimension_numbers = #tpu.dot_dimension_numbers<[1], [0], [0], [1], [0, 0, 1, 1], [], []>} : vector<16x16xbf16>, vector<16x128xbf16>, vector<16x128xf32> -> vector<16x128xf32>
    %38 = vector.broadcast %10 : vector<16x1xf32> to vector<16x128xf32>
    %39 = arith.addf %37, %38 : vector<16x128xf32>
    %cst_27 = arith.constant 0.000000e+00 : f32
    %40 = vector.broadcast %cst_27 : f32 to vector<16x128xf32>
    %41 = arith.maximumf %39, %40 : vector<16x128xf32>
    %42 = arith.truncf %41 : vector<16x128xf32> to vector<16x128xbf16>
    %cst_28 = arith.constant dense<0.000000e+00> : vector<2x128xf32>
    %43 = tpu.matmul %5, %42, %cst_28 {dimension_numbers = #tpu.dot_dimension_numbers<[1], [0], [0], [1], [0, 0, 1, 1], [], []>} : vector<2x16xbf16>, vector<16x128xbf16>, vector<2x128xf32> -> vector<2x128xf32>
    %44 = vector.broadcast %11 : vector<2x1xf32> to vector<2x128xf32>
    %45 = arith.addf %43, %44 : vector<2x128xf32>
    %c0_29 = arith.constant 0 : index
    %c0_30 = arith.constant 0 : index
    %46 = vector.load %arg4[%c0_29, %c0_30] : memref<2x256xf32, #tpu.memory_space<vmem>>, vector<2x128xf32>
    tpu.vector_store %arg4[%c0_29, %c0_30], %45 {strides = array<i32>} : memref<2x256xf32, #tpu.memory_space<vmem>>, vector<2x128xf32>,
    %c0_31 = arith.constant 0 : index
    %c128 = arith.constant 128 : index
    %47 = vector.load %arg1[%c0_31, %c128] : memref<32x256xbf16, #tpu.memory_space<vmem>>, vector<32x128xbf16>
    %cst_32 = arith.constant dense<0.000000e+00> : vector<32x128xf32>
    %48 = tpu.matmul %0, %47, %cst_32 {dimension_numbers = #tpu.dot_dimension_numbers<[1], [0], [0], [1], [0, 0, 1, 1], [], []>} : vector<32x32xbf16>, vector<32x128xbf16>, vector<32x128xf32> -> vector<32x128xf32>
    %49 = vector.broadcast %6 : vector<32x1xf32> to vector<32x128xf32>
    %50 = arith.addf %48, %49 : vector<32x128xf32>
    %cst_33 = arith.constant 0.000000e+00 : f32
    %51 = vector.broadcast %cst_33 : f32 to vector<32x128xf32>
    %52 = arith.maximumf %50, %51 : vector<32x128xf32>
    %53 = arith.truncf %52 : vector<32x128xf32> to vector<32x128xbf16>
    %cst_34 = arith.constant dense<0.000000e+00> : vector<16x128xf32>
    %54 = tpu.matmul %1, %53, %cst_34 {dimension_numbers = #tpu.dot_dimension_numbers<[1], [0], [0], [1], [0, 0, 1, 1], [], []>} : vector<16x32xbf16>, vector<32x128xbf16>, vector<16x128xf32> -> vector<16x128xf32>
    %55 = vector.broadcast %7 : vector<16x1xf32> to vector<16x128xf32>
    %56 = arith.addf %54, %55 : vector<16x128xf32>
    %cst_35 = arith.constant 0.000000e+00 : f32
    %57 = vector.broadcast %cst_35 : f32 to vector<16x128xf32>
    %58 = arith.maximumf %56, %57 : vector<16x128xf32>
    %59 = arith.truncf %58 : vector<16x128xf32> to vector<16x128xbf16>
    %cst_36 = arith.constant dense<0.000000e+00> : vector<16x128xf32>
    %60 = tpu.matmul %2, %59, %cst_36 {dimension_numbers = #tpu.dot_dimension_numbers<[1], [0], [0], [1], [0, 0, 1, 1], [], []>} : vector<16x16xbf16>, vector<16x128xbf16>, vector<16x128xf32> -> vector<16x128xf32>
    %61 = vector.broadcast %8 : vector<16x1xf32> to vector<16x128xf32>
    %62 = arith.addf %60, %61 : vector<16x128xf32>
    %cst_37 = arith.constant 0.000000e+00 : f32
    %63 = vector.broadcast %cst_37 : f32 to vector<16x128xf32>
    %64 = arith.maximumf %62, %63 : vector<16x128xf32>
    %65 = arith.truncf %64 : vector<16x128xf32> to vector<16x128xbf16>
    %cst_38 = arith.constant dense<0.000000e+00> : vector<16x128xf32>
    %66 = tpu.matmul %3, %65, %cst_38 {dimension_numbers = #tpu.dot_dimension_numbers<[1], [0], [0], [1], [0, 0, 1, 1], [], []>} : vector<16x16xbf16>, vector<16x128xbf16>, vector<16x128xf32> -> vector<16x128xf32>
    %67 = vector.broadcast %9 : vector<16x1xf32> to vector<16x128xf32>
    %68 = arith.addf %66, %67 : vector<16x128xf32>
    %69 = arith.extf %59 : vector<16x128xbf16> to vector<16x128xf32>
    %70 = arith.addf %69, %68 : vector<16x128xf32>
    %71 = arith.truncf %70 : vector<16x128xf32> to vector<16x128xbf16>
    %cst_39 = arith.constant dense<0.000000e+00> : vector<16x128xf32>
    %72 = tpu.matmul %4, %71, %cst_39 {dimension_numbers = #tpu.dot_dimension_numbers<[1], [0], [0], [1], [0, 0, 1, 1], [], []>} : vector<16x16xbf16>, vector<16x128xbf16>, vector<16x128xf32> -> vector<16x128xf32>
    %73 = vector.broadcast %10 : vector<16x1xf32> to vector<16x128xf32>
    %74 = arith.addf %72, %73 : vector<16x128xf32>
    %cst_40 = arith.constant 0.000000e+00 : f32
    %75 = vector.broadcast %cst_40 : f32 to vector<16x128xf32>
    %76 = arith.maximumf %74, %75 : vector<16x128xf32>
    %77 = arith.truncf %76 : vector<16x128xf32> to vector<16x128xbf16>
    %cst_41 = arith.constant dense<0.000000e+00> : vector<2x128xf32>
    %78 = tpu.matmul %5, %77, %cst_41 {dimension_numbers = #tpu.dot_dimension_numbers<[1], [0], [0], [1], [0, 0, 1, 1], [], []>} : vector<2x16xbf16>, vector<16x128xbf16>, vector<2x128xf32> -> vector<2x128xf32>
    %79 = vector.broadcast %11 : vector<2x1xf32> to vector<2x128xf32>
    %80 = arith.addf %78, %79 : vector<2x128xf32>
    %c0_42 = arith.constant 0 : index
    %c128_43 = arith.constant 128 : index
    %81 = vector.load %arg4[%c0_42, %c128_43] : memref<2x256xf32, #tpu.memory_space<vmem>>, vector<2x128xf32>
    tpu.vector_store %arg4[%c0_42, %c128_43], %80 {strides = array<i32>} : memref<2x256xf32, #tpu.memory_space<vmem>>, vector<2x128xf32>,
    return
  }
  func.func @transform_0(%arg0: i32) -> (i32, i32) {
    %c0_i32 = arith.constant 0 : i32
    %c0_i32_0 = arith.constant 0 : i32
    return %c0_i32, %arg0 : i32, i32
  }
  func.func @transform_1(%arg0: i32) -> (i32, i32) {
    %c0_i32 = arith.constant 0 : i32
    %c0_i32_0 = arith.constant 0 : i32
    %c0_i32_1 = arith.constant 0 : i32
    return %c0_i32, %c0_i32_0 : i32, i32
  }
  func.func @transform_2(%arg0: i32) -> (i32, i32) {
    %c0_i32 = arith.constant 0 : i32
    %c0_i32_0 = arith.constant 0 : i32
    %c0_i32_1 = arith.constant 0 : i32
    return %c0_i32, %c0_i32_0 : i32, i32
  }
  func.func @transform_3(%arg0: i32) -> (i32, i32) {
    %c0_i32 = arith.constant 0 : i32
    %c0_i32_0 = arith.constant 0 : i32
    return %c0_i32, %arg0 : i32, i32
  }
}

</mosaic_0001>

<bundles_post_ra>
// kernel: tpu_custom_call.1
= control target key start
LH: loop header
LB: loop body
LE: loop exit
PB: predicated region body
PF: predicated region fallthrough
CT: control target
= control target key end

     0   :  { %8 = vsyncpa [#allocation4], 0  ;;  %s1154_s0 = inlined_call_operand.vmem [shape: bf16[32,512], index: 0, kind: input, shape index: {}]   ;;  %s1155_s1 = inlined_call_operand.vmem [shape: bf16[112,32], index: 1, kind: input, shape index: {}]   ;;  %s1156_s2 = inlined_call_operand.vmem [shape: f32[112,1], index: 2, kind: input, shape index: {}]   ;;  %s1157_s3 = inlined_call_operand.hbm [shape: f32[2,512], index: 3, kind: output, shape index: {}]  }
   0x1   :  { %10 = vsyncpa [#allocation4 + $0x1], 0  ;;  %s918_s12 = smov 0   ;;  %s920_s13 = smov 0  }
   0x2   :  { %s922_s14 = smov 0   ;;  %s924_s15 = smov 0  }
   0x3 LB: > { %s709_s16 = sadd.s32 4294967295, %s895_s15   ;;  %s710_s17 = sadd.s32 4294967294, %s895_s15   ;;  %s895_s15 = sphi %s924_s15, %s1163_s15   ;;  %s891_s14 = sphi %s922_s14, %s1162_s14   ;;  %s887_s13 = sphi %s920_s13, %s1161_s13   ;;  %s883_s12 = sphi %s918_s12, %s1160_s12  }
   0x4   : > { %s941_s18 = sadd.s32 1, %s895_s15   ;;  %s23_s19 = sadd.s32 1, %s891_s14 }
   0x5   : > { %s20_s20 = ssub.s32 %s895_s15, %s941_s18  ;;  %p30_p0 = scmp.ne.s32.totalorder %s891_s14, %s887_s13 }
   0x6   : > { %p21_p1 = scmp.eq.s32.totalorder %s20_s20, 0  ;;  %p31_p2 = scmp.eq.s32.totalorder %s895_s15, 0 }
   0x7   : > { %p102_p3 = scmp.eq.s32.totalorder %s709_s16, 1  ;;  %p107_p4 = scmp.ne.s32.totalorder %s887_s13, %s883_s12 }
   0x8   : > { %s954_s21 = scalar_select %p21_p1, %s891_s14, %s23_s19  }
   0x9   : > { %p32_p5 = por %p31_p2, %p30_p0  ;;  %p956_p6 = por %p102_p3, %p30_p0 }
   0xa   : > { %p108_p7 = scmp.eq.s32.totalorder %s710_s17, 1  ;;  %p712_p9 = scmp.ge.s32.totalorder %s895_s15, 2 }
   0xc   : > { %p960_p8 = por %p108_p7, %p107_p4  ;;  %130 = sbr.rel (%p712_p9) target bundleno = 25 (0x19), region = 24 }
  0x11   : > { %133 = sbr.rel (!%p32_p5) target bundleno = 25 (0x19), region = 28  ;;  %s135_s24 = sand.u32 (%p32_p5), 1, %s891_s14  }
  0x12   : > { %s778_s25 = sshll.u32 (%p32_p5), %s895_s15, 3  ;;  %s713_s26 = sshll.u32 (%p32_p5), %s135_s24, 5 }
  0x13   : > { %s140_s29 = scalar_lea.vmem (%p32_p5), %s1154_s0, %s778_s25  ;;  %s137_s30 = scalar_lea.vmem (%p32_p5), [#allocation2], %s713_s26 }
  0x14   : > { %v175_v0 = vld [vmem:[%s140_s29] sm:$0xff] (%p32_p5)  ;;  %v177_v1 = vld [vmem:[%s140_s29 + $0x10] sm:$0xff] (%p32_p5) }
  0x15   : > { %v179_v2 = vld [vmem:[%s140_s29 + $0x20] sm:$0xff] (%p32_p5)  ;;  %176 = vst [vmem:[%s137_s30] sm:$0xff] (%p32_p5), %v175_v0  ;;  %v181_v3 = vld [vmem:[%s140_s29 + $0x30] sm:$0xff] (%p32_p5) }
  0x16   : > { %178 = vst [vmem:[%s137_s30 + $0x8] sm:$0xff] %v177_v1 }
  0x17   : > { %180 = vst [vmem:[%s137_s30 + $0x10] sm:$0xff] %v179_v2 }
  0x18   : > { %182 = vst [vmem:[%s137_s30 + $0x18] sm:$0xff] %v181_v3 }
  0x19 PF: > { %p716_p10 = scmp.ge.s32.totalorder %s895_s15, 1  ;;  %p187_p11 = scmp.lt.s32.totalorder %s895_s15, 3 }
  0x1b   : > { %p188_p12 = pnand %p716_p10, %p187_p11 }
  0x1c   : > { %s975_s4 = sand.u32 (!%p188_p12), 1, %s887_s13   ;;  %s789_s25 = sshll.u32 (!%p188_p12), %s709_s16, 2 }
  0x1d   : > { %191 = sbr.rel (%p188_p12) target bundleno = 1403 (0x57b), region = 66  ;;  %s717_s7 = sshll.u32 (!%p188_p12), %s975_s4, 5 }
  0x1e   : > { %s984_s10 = scalar_lea.vmem (!%p188_p12), [#allocation2], %s717_s7  ;;  %s718_s20 = sshll.u32 (!%p188_p12), %s975_s4, 2 }
  0x1f   : > { %s1107_s24 = scalar_lea.vmem (!%p188_p12), [#allocation3], %s718_s20  ;;  %s640_s28 = scalar_lea.hbm (!%p188_p12), %s1157_s3, %s789_s25 }
  0x20   : > { %s642_s29 = sshll.u32 (!%p188_p12), %s1107_s24, 4  ;;  %s644_s30 = sshll.u32 (!%p188_p12), %s640_s28, 4  ;;  %s643_s29 = int_to_ptr.vmem [resolvable:$true] %s642_s29  ;;  %s645_s30 = int_to_ptr.hbm [resolvable:$true] %s644_s30 }
  0x21   : > { %s629_s5 = scalar_lea.sflag (!%p188_p12), [#allocation4], %s975_s4  ;;  %s853_s8 = scalar_lea.hbm (!%p188_p12), %s1157_s3, 8 }
  0x22   : > { %v235_v4 = vld [vmem:[%s1156_s2 + $0x10] sm:$0xff]  ;;  %v897_v5 = vmov 0   ;;  %v233_v6 = vld [vmem:[%s1156_s2] sm:$0xff]  ;;  %v786_v8 = vld [vmem:[%s984_s10 + $0x14] sm:$0xf0]  ;;  %vm292_vm0 = vcmask 261120  }
  0x23   : > { %830 = vset.pattern.permute.xlu0 %v897_v5  ;;  %831 = vset.pattern.permute.xlu1 %v897_v5  ;;  %v733_v7 = vld [vmem:[%s984_s10 + $0x10] sm:$0xf]  ;;  %v729_v9 = vld [vmem:[%s984_s10] sm:$0xf]  ;;  %v785_v11 = vld [vmem:[%s984_s10 + $0x4] sm:$0xf0] }
  0x24   : > { %262 = vperm.xlu0 %830, %v235_v4   ;;  %252 = vperm.xlu1 %831, %v233_v6   ;;  %v734_v10 = vor.u32 %v786_v8, %v733_v7  ;;  %v730_v12 = vor.u32 %v785_v11, %v729_v9  ;;  %v236_v13 = vld [vmem:[%s1156_s2 + $0x18] sm:$0xff]  ;;  %v234_v14 = vld [vmem:[%s1156_s2 + $0x8] sm:$0xff]  ;;  %v779_v15 = vld [vmem:[%s1155_s1] sm:$0xff]  ;;  %vm381_vm1 = vcmask 130048  }
  0x25   : > { %832 = vset.pattern.permute.xlu2 %v897_v5  ;;  %v239_v16 = vld [vmem:[%s1156_s2 + $0x30] sm:$0xff]  ;;  %v240_v17 = vld [vmem:[%s1156_s2 + $0x38] sm:$0xff]  ;;  %v242_v18 = vld [vmem:[%s1156_s2 + $0x48] sm:$0xff] }
  0x26   : > { %305 = vmatpush.bf16.msra.mxu0 %v734_v10  ;;  %v243_v19 = vld [vmem:[%s1156_s2 + $0x50] sm:$0xff]  ;;  %v780_v20 = vld [vmem:[%s1155_s1 + $0x8] sm:$0xff]  ;;  %v245_v21 = vld [vmem:[%s1156_s2 + $0x60] sm:$0x3] }
  0x27   : > { %v237_v23 = vld [vmem:[%s1156_s2 + $0x20] sm:$0xff]  ;;  %v238_v28 = vld [vmem:[%s1156_s2 + $0x28] sm:$0xff]  ;;  %v764_v41 = vld [vmem:[%s984_s10 + $0x14] sm:$0xf] }
  0x28   : > { %326 = vperm.xlu2 %832, %v237_v23   ;;  %v241_v38 = vld [vmem:[%s1156_s2 + $0x40] sm:$0xff]  ;;  %v788_v42 = vld [vmem:[%s984_s10 + $0x18] sm:$0xf0]  ;;  %v787_v47 = vld [vmem:[%s984_s10 + $0x8] sm:$0xf0] }
  0x29   : > { %v765_v44 = vor.u32 %v788_v42, %v764_v41  ;;  %v760_v46 = vld [vmem:[%s984_s10 + $0x4] sm:$0xf]  ;;  %v1047_v48 = vld [vmem:[%s1155_s1 + $0x10] sm:$0xff]  ;;  %v244_v50 = vld [vmem:[%s1156_s2 + $0x58] sm:$0xff]  ;;  %s847_s10 = sshra.s32 %s645_s30, 4  ;;  %s848_s10 = int_to_ptr.hbm [resolvable:$true] %s847_s10 }
  0x2a   : > { %306 = vmatpush.bf16.msra.mxu0 %v730_v12  ;;  %v761_v49 = vor.u32 %v787_v47, %v760_v46  ;;  %v1065_v0 = vld [vmem:[%s1155_s1 + $0x18] sm:$0xff]  ;;  %v1078_v10 = vld [vmem:[%s1155_s1 + $0x20] sm:$0xff]  ;;  %v232_v46 = vld [vmem:[%s1155_s1 + $0x30] sm:$0x1]  ;;  %s849_s6 = scalar_lea.hbm %s848_s10, 4  ;;  %p854_p2 = scmp.lt.s32.totalorder %s848_s10, %s1157_s3 }
  0x2b   : > { %p850_p13 = scmp.ne.s32.totalorder %s848_s10, %s849_s6  ;;  %p855_p3 = scmp.lt.s32.totalorder %s853_s8, %s849_s6 }
  0x2c   : > { %267 = vperm.xlu0 %830, %v236_v13   ;;  %257 = vperm.xlu1 %831, %v234_v14  }
  0x2d   : > { %735 = vmatmul.msk.bf16.vlgmr.msra.gmra.mxu0 %vm292_vm0, %v779_v15  ;;  %p851_p0 = pnand %p850_p13, %p956_p6  ;;  %p856_p4 = por %p855_p3, %p854_p2 }
  0x2f   : > { %p852_p1 = pneg %p851_p0 }
  0x30   : > { %331 = vperm.xlu2 %832, %v238_v28  }
  0x31   : > { %p857_p5 = pnand %p856_p4, %p852_p1 }
  0x34   : > { %362 = vperm.xlu0 %830, %v239_v16   ;;  %367 = vperm.xlu1 %831, %v240_v17  }
  0x38   : > { %404 = vperm.xlu2 %832, %v241_v38  }
  0x3c   : > { %409 = vperm.xlu0 %830, %v242_v18   ;;  %441 = vperm.xlu1 %831, %v243_v19  }
  0x3d   : > { %736 = vmatmul.msk.bf16.gmra.mxu0 %vm292_vm0, %v780_v20 }
  0x40   : > { %446 = vperm.xlu2 %832, %v244_v50  }
  0x44   : > { %476 = vperm.xlu0 %830, %v245_v21  }
  0x82   : > { %v1056_v51 = vpop.permute.xlu2 %326 }
  0x8a   : > { %v1059_v55 = vpop.permute.xlu2 %331 }
  0x92   : > { %v1082_v16 = vpop.permute.xlu2 %404 }
  0x96   : > { %v1022_v25 = vpop.permute.xlu0 %262  ;;  %v1024_v26 = vpop.permute.xlu1 %252 }
  0x9e   : > { %v1029_v29 = vpop.permute.xlu0 %267  ;;  %v1032_v31 = vpop.permute.xlu1 %257 }
  0xa6   : > { %v1069_v2 = vpop.permute.xlu0 %362  ;;  %v1072_v4 = vpop.permute.xlu1 %367 }
  0xaa   : > { %v308_v22 = vpop.f32.mrf.mxu0 }
  0xab   : > { %v309_v35 = vadd.f32 %v308_v22, %v1024_v26 }
  0xad   : > { %v318_v43 = vmax.f32 %v309_v35, 0.0 }
  0xae   : > { %v1086_v19 = vpop.permute.xlu0 %409 }
  0xb2   : > { %v310_v24 = vpop.f32.mrf.mxu0 }
  0xb3   : > { %v311_v33 = vadd.f32 %v310_v24, %v1032_v31 }
  0xb5   : > { %v319_v39 = vmax.f32 %v311_v33, 0.0 }
  0xb7   : > { %v322_v45 = vpack.c.bf16 %v319_v39, %v318_v43 }
  0xba   : > { %v313_v27 = vpop.f32.mrf.mxu0 }
  0xbb   : > { %v314_v30 = vadd.f32 %v313_v27, %v1022_v25 }
  0xbd   : > { %v320_v36 = vmax.f32 %v314_v30, 0.0 }
  0xc2   : > { %v315_v32 = vpop.f32.mrf.mxu0 }
  0xc3   : > { %v316_v34 = vadd.f32 %v315_v32, %v1029_v29 }
  0xc5   : > { %v321_v37 = vmax.f32 %v316_v34, 0.0 }
  0xc7   : > { %v323_v40 = vpack.c.bf16 %v321_v37, %v320_v36 }
  0xc9   : > { %348 = vmatpush.bf16.msra.mxu1 %v323_v40  ;;  %v447_v40 = vpop.permute.xlu2 %446 }
  0xcd   : > { %349 = vmatpush.bf16.msra.mxu1 %v322_v45 }
  0xd0   : > { %741 = vmatmul.msk.bf16.vlgmr.msra.gmra.mxu1 %vm292_vm0, %v1047_v48 }
  0xd1   : > { %518 = vmatpush.bf16.msrb.mxu1 %v765_v44 }
  0xd5   : > { %519 = vmatpush.bf16.msrb.mxu1 %v761_v49 }
  0xe0   : > { %766 = vmatmul.msk.bf16.vlgmr.msrb.gmra.mxu1 %vm292_vm0, %v779_v15 }
  0xf0   : > { %767 = vmatmul.msk.bf16.gmra.mxu1 %vm292_vm0, %v780_v20 }
 0x14d   : > { %v351_v52 = vpop.f32.mrf.mxu1 }
 0x14e   : > { %v352_v53 = vadd.f32 %v351_v52, %v1056_v51 }
 0x150   : > { %v356_v54 = vmax.f32 %v352_v53, 0.0 }
 0x152   : > { %v358_v58 = vpack.c.bf16 %v356_v54, %v356_v54 }
 0x154   : > { %v377_v61 = vunpack.c.l.b16 %v358_v58  ;;  %v434_v22 = vunpack.c.l.bf16 %v358_v58 }
 0x155   : > { %v353_v56 = vpop.f32.mrf.mxu1 }
 0x156   : > { %v354_v57 = vadd.f32 %v353_v56, %v1059_v55 }
 0x158   : > { %v357_v59 = vmax.f32 %v354_v57, 0.0 }
 0x15a   : > { %v359_v60 = vpack.c.bf16 %v357_v59, %v357_v59 }
 0x15c   : > { %v378_v62 = vunpack.c.l.b16 %v359_v60  ;;  %v435_v23 = vunpack.c.l.bf16 %v359_v60  ;;  %v477_v60 = vpop.permute.xlu0 %476 }
 0x15d   : > { %v521_v11 = vpop.f32.mrf.mxu1 }
 0x15e   : > { %v379_v63 = vpack.c.b16 %v378_v62, %v377_v61  ;;  %v522_v33 = vadd.f32 %v521_v11, %v1024_v26  ;;  %v442_v26 = vpop.permute.xlu1 %441 }
 0x160   : > { %392 = vmatpush.bf16.msra.mxu2 %v379_v63  ;;  %v531_v37 = vmax.f32 %v522_v33, 0.0 }
 0x163   : > { %746 = vmatmul.msk.bf16.vlgmr.msra.gmra.mxu2 %vm381_vm1, %v1065_v0 }
 0x165   : > { %v523_v12 = vpop.f32.mrf.mxu1 }
 0x166   : > { %v524_v27 = vadd.f32 %v523_v12, %v1032_v31 }
 0x168   : > { %v532_v35 = vmax.f32 %v524_v27, 0.0 }
 0x16a   : > { %v535_v38 = vpack.c.bf16 %v532_v35, %v531_v37 }
 0x16d   : > { %v526_v13 = vpop.f32.mrf.mxu1 }
 0x16e   : > { %v527_v20 = vadd.f32 %v526_v13, %v1022_v25  ;;  %v784_v25 = vld [vmem:[%s1155_s1 + $0x28] sm:$0xff] }
 0x170   : > { %v533_v34 = vmax.f32 %v527_v20, 0.0 }
 0x175   : > { %v528_v15 = vpop.f32.mrf.mxu1 }
 0x176   : > { %v529_v17 = vadd.f32 %v528_v15, %v1029_v29 }
 0x178   : > { %v534_v28 = vmax.f32 %v529_v17, 0.0 }
 0x17a   : > { %v536_v36 = vpack.c.bf16 %v534_v28, %v533_v34 }
 0x1e6   : > { %v394_v1 = vpop.f32.mrf.mxu2 }
 0x1e7   : > { %v395_v3 = vadd.f32 %v394_v1, %v1069_v2 }
 0x1e9   : > { %v399_v7 = vmax.f32 %v395_v3, 0.0 }
 0x1ee   : > { %v396_v5 = vpop.f32.mrf.mxu2 }
 0x1ef   : > { %v397_v6 = vadd.f32 %v396_v5, %v1072_v4 }
 0x1f1   : > { %v400_v8 = vmax.f32 %v397_v6, 0.0 }
 0x1f3   : > { %v401_v9 = vpack.c.bf16 %v400_v8, %v399_v7 }
 0x1f5   : > { %427 = vmatpush.bf16.msra.mxu3 %v401_v9 }
 0x1f8   : > { %751 = vmatmul.msk.bf16.vlgmr.msra.gmra.mxu3 %vm381_vm1, %v1078_v10 }
 0x27b   : > { %v429_v14 = vpop.f32.mrf.mxu3 }
 0x27c   : > { %v430_v18 = vadd.f32 %v429_v14, %v1082_v16 }
 0x27e   : > { %v436_v30 = vadd.f32 %v434_v22, %v430_v18 }
 0x283   : > { %v431_v21 = vpop.f32.mrf.mxu3 }
 0x284   : > { %v432_v24 = vadd.f32 %v431_v21, %v1086_v19 }
 0x286   : > { %v437_v32 = vadd.f32 %v435_v23, %v432_v24 }
 0x288   : > { %v438_v29 = vpack.c.bf16 %v437_v32, %v436_v30 }
 0x28a   : > { %464 = vmatpush.bf16.msrb.mxu2 %v438_v29 }
 0x28d   : > { %756 = vmatmul.msk.bf16.vlgmr.msrb.gmra.mxu2 %vm381_vm1, %v784_v25 }
 0x28e   : > { %543 = vmatpush.bf16.msra.mxu2 %v536_v36 }
 0x292   : > { %544 = vmatpush.bf16.msra.mxu2 %v535_v38 }
 0x29d   : > { %768 = vmatmul.msk.bf16.vlgmr.msra.gmra.mxu2 %vm292_vm0, %v1047_v48 }
 0x310   : > { %v466_v31 = vpop.f32.mrf.mxu2 }
 0x311   : > { %v467_v39 = vadd.f32 %v466_v31, %v442_v26 }
 0x313   : > { %v471_v43 = vmax.f32 %v467_v39, 0.0 }
 0x318   : > { %v468_v41 = vpop.f32.mrf.mxu2 }
 0x319   : > { %v469_v42 = vadd.f32 %v468_v41, %v447_v40 }
 0x31b   : > { %v472_v44 = vmax.f32 %v469_v42, 0.0 }
 0x31d   : > { %v473_v45 = vpack.c.bf16 %v472_v44, %v471_v43 }
 0x31f   : > { %489 = vmatpush.bf16.msrb.mxu3 %v473_v45 }
 0x320   : > { %v546_v47 = vpop.f32.mrf.mxu2 }
 0x321   : > { %v547_v48 = vadd.f32 %v546_v47, %v1056_v51 }
 0x322   : > { %757 = vmatmul.msk.bf16.vlgmr.msrb.gmra.mxu3 %vm381_vm1, %v232_v46 }
 0x323   : > { %v551_v49 = vmax.f32 %v547_v48, 0.0 }
 0x325   : > { %v553_v53 = vpack.c.bf16 %v551_v49, %v551_v49 }
 0x327   : > { %v557_v57 = vunpack.c.l.b16 %v553_v53  ;;  %v592_v11 = vunpack.c.l.bf16 %v553_v53 }
 0x328   : > { %v548_v50 = vpop.f32.mrf.mxu2 }
 0x329   : > { %v549_v52 = vadd.f32 %v548_v50, %v1059_v55 }
 0x32b   : > { %v552_v54 = vmax.f32 %v549_v52, 0.0 }
 0x32d   : > { %v554_v56 = vpack.c.bf16 %v552_v54, %v552_v54 }
 0x32f   : > { %v558_v58 = vunpack.c.l.b16 %v554_v56  ;;  %v593_v12 = vunpack.c.l.bf16 %v554_v56 }
 0x331   : > { %v559_v59 = vpack.c.b16 %v558_v58, %v557_v57 }
 0x333   : > { %568 = vmatpush.bf16.msra.mxu3 %v559_v59 }
 0x336   : > { %769 = vmatmul.msk.bf16.vlgmr.msra.gmra.mxu3 %vm381_vm1, %v1065_v0 }
 0x3a5   : > { %v491_v61 = vpop.f32.mrf.mxu3 }
 0x3a6   : > { %v492_v62 = vadd.f32 %v491_v61, %v477_v60 }
 0x3a8   : > { %495 = vst [vmem:[%s1107_s24] sm:$0x3] %v492_v62 }
 0x3ad   : > { %v493_v51 = vpop.f32.mrf.mxu3 }
 0x3b9   : > { %v570_v55 = vpop.f32.mrf.mxu3 }
 0x3ba   : > { %v571_v63 = vadd.f32 %v570_v55, %v1069_v2 }
 0x3bc   : > { %v575_v5 = vmax.f32 %v571_v63, 0.0 }
 0x3c1   : > { %v572_v1 = vpop.f32.mrf.mxu3 }
 0x3c2   : > { %v573_v3 = vadd.f32 %v572_v1, %v1072_v4 }
 0x3c4   : > { %v576_v6 = vmax.f32 %v573_v3, 0.0 }
 0x3c6   : > { %v577_v7 = vpack.c.bf16 %v576_v6, %v575_v5 }
 0x3c8   : > { %585 = vmatpush.bf16.msrb.mxu0 %v577_v7 }
 0x3cb   : > { %770 = vmatmul.msk.bf16.vlgmr.msrb.gmra.mxu0 %vm381_vm1, %v1078_v10 }
 0x448   : > { %v587_v0 = vpop.f32.mrf.mxu0 }
 0x449   : > { %v588_v8 = vadd.f32 %v587_v0, %v1082_v16 }
 0x44b   : > { %v594_v2 = vadd.f32 %v592_v11, %v588_v8 }
 0x450   : > { %v589_v9 = vpop.f32.mrf.mxu0 }
 0x451   : > { %v590_v13 = vadd.f32 %v589_v9, %v1086_v19 }
 0x453   : > { %v595_v14 = vadd.f32 %v593_v12, %v590_v13 }
 0x455   : > { %v596_v4 = vpack.c.bf16 %v595_v14, %v594_v2 }
 0x457   : > { %604 = vmatpush.bf16.msrb.mxu2 %v596_v4 }
 0x45a   : > { %771 = vmatmul.msk.bf16.vlgmr.msrb.gmra.mxu2 %vm381_vm1, %v784_v25 }
 0x4dd   : > { %v606_v15 = vpop.f32.mrf.mxu2 }
 0x4de   : > { %v607_v17 = vadd.f32 %v606_v15, %v442_v26 }
 0x4e0   : > { %v611_v16 = vmax.f32 %v607_v17, 0.0 }
 0x4e5   : > { %v608_v10 = vpop.f32.mrf.mxu2 }
 0x4e6   : > { %v609_v18 = vadd.f32 %v608_v10, %v447_v40 }
 0x4e8   : > { %v612_v20 = vmax.f32 %v609_v18, 0.0 }
 0x4ea   : > { %v613_v21 = vpack.c.bf16 %v612_v20, %v611_v16 }
 0x4ec   : > { %621 = vmatpush.bf16.msrb.mxu3 %v613_v21 }
 0x4ef   : > { %772 = vmatmul.msk.bf16.vlgmr.msrb.gmra.mxu3 %vm381_vm1, %v232_v46 }
 0x572   : > { %v623_v19 = vpop.f32.mrf.mxu3 }
 0x573   : > { %v624_v22 = vadd.f32 %v623_v19, %v477_v60 }
 0x575   : > { %627 = vst [vmem:[%s1107_s24 + $0x2] sm:$0x3] %v624_v22 }
 0x576   : > { %860 = shalt.err (!%p857_p5)
}
 0x577   : > { %790 = dma.vmem_to_hbm [thread:$0]  (%p956_p6), %s643_s29, 64, %s645_s30, %s629_s5  }
 0x57a   : > { %v625_v23 = vpop.f32.mrf.mxu3 }
 0x57b PF: > { %s656_s4 = sand.u32 1, %s883_s12   ;;  %p793_p7 = pnand %p712_p9, %p960_p8 }
 0x57c   : > { %s657_s17 = scalar_lea.sflag [#allocation4], %s656_s4 }
 0x57d   : > { %p794_p10 = pneg %p793_p7 }
 0x57f   : > { %878 = dma.done.wait (%p794_p10), %s657_s17, 64  }
 0x580   : > { %880 = vsyncadd (%p794_p10), %s657_s17, 4294967232  ;;  %p13_p11 = scmp.ge.s32.totalorder %s941_s18, 4   ;;  %s1160_s12 = smov %s887_s13 }
 0x581   : > { %s1161_s13 = smov %s891_s14  ;;  %s1162_s14 = smov %s954_s21 }
 0x582   : > { %s1163_s15 = smov %s941_s18  ;;  %15 = sbr.rel (!%p13_p11) target bundleno = 3 (0x3), region = 110 }
 0x587   :  { %663 = vsyncpa [#allocation4], 1 }
 0x588   :  { %665 = vsyncpa [#allocation4 + $0x1], 1 }

</bundles_post_ra>
